<compile_context>
chip_gen: v6e
topology: v6e:2x2x1
jax: 0.10.0
libtpu: 0.0.40
codegen_flags: <defaults>
</compile_context>

<pallas_src>
import jax
import jax.numpy as jnp
from jax import lax
from jax.experimental import pallas as pl
from jax.experimental.pallas import tpu as pltpu

EPS = 1e-5
_MIB = 1024 * 1024


# ----------------------------------------------------------------------------
# Hardware detection (trace time, best effort, always falls back safely).
# ----------------------------------------------------------------------------
def _detect_tpu():
    gen = None
    vmem_cap = None
    try:
        kind = jax.devices()[0].device_kind.lower()  # e.g. "tpu v6e"
        for g in (7, 6, 5, 4):
            if f"v{g}" in kind:
                gen = g
                break
    except Exception:
        pass
    try:
        info = pltpu.get_tpu_info()
        vmem_cap = getattr(info, "vmem_capacity_bytes", None)
    except Exception:
        pass
    return gen, vmem_cap


def _generation_params():
    """Returns (gen_class, gen, vmem_limit_bytes, num_tensorcores)."""
    gen, vmem_cap = _detect_tpu()
    if (gen is not None and gen >= 7) or (
        gen is None and vmem_cap is not None and vmem_cap <= 80 * _MIB
    ):
        gen_class, vmem_limit, num_tc = "v7x", 56 * _MIB, 2
    elif gen in (4, 5, 6) or (vmem_cap is not None and vmem_cap > 80 * _MIB):
        gen_class, vmem_limit, num_tc = "v56", 96 * _MIB, 1
    else:
        gen_class, vmem_limit, num_tc = "unknown", 48 * _MIB, 2
    if vmem_cap is not None:
        vmem_limit = min(vmem_limit, (vmem_cap * 7) // 8)  # keep headroom
    return gen_class, gen, vmem_limit, num_tc


def _tile_elems_budget(itemsize, gen_class):
    """Per-grid-step input-tile element budget (keeps double-buffered in/out
    tiles + f32 intermediates under each generation's VMEM limit)."""
    if gen_class == "v7x":
        # f32: ~1.25M elems -> ~35 MiB working set; 16-bit: 2M -> ~32-40 MiB.
        return 1_310_720 if itemsize >= 4 else 2_097_152
    if gen_class == "v56":
        # 96 MiB limit: f32 2M -> ~56 MiB; 16-bit 3M -> ~60 MiB.
        return 2_097_152 if itemsize >= 4 else 3_145_728
    return 1_048_576  # conservative fallback, fits every generation


def _pick_row_tile(rows, D, itemsize, tile_elems_budget, min_grid_steps):
    """Largest row tile under the element budget, rounded to sublane packing,
    while targeting >= min_grid_steps grid steps so DMA pipelines."""
    if itemsize >= 4:
        sub = 8
    elif itemsize == 2:
        sub = 16
    else:
        sub = 32
    rows_rounded = pl.cdiv(rows, sub) * sub
    # No hard row cap: budget//D is the only limit (function of D, not const).
    rt = (tile_elems_budget // max(D, 1)) // sub * sub
    rt = max(sub, rt)
    rt = min(rt, rows_rounded)
    # Target >= min_grid_steps steps (>= 4 per TensorCore) so the BlockSpec
    # double buffer overlaps DMA with compute even after 2-TC sharding.
    if rows_rounded >= min_grid_steps * sub:
        per_step = -(-rows_rounded // min_grid_steps)  # ceil div
        per_step = max(sub, (per_step // sub) * sub)
        rt = min(rt, per_step)
    return rt


# ----------------------------------------------------------------------------
# Kernels.
# ----------------------------------------------------------------------------
def _stats_f32(x_ref):
    # Mean / centered variance / rsqrt always in f32 (matches torch semantics:
    # eps added to variance). Two-pass centered variance kept on purpose.
    x = x_ref[...].astype(jnp.float32)
    mean = jnp.mean(x, axis=-1, keepdims=True)
    centered = x - mean
    var = jnp.mean(centered * centered, axis=-1, keepdims=True)
    inv = lax.rsqrt(var + EPS)
    return centered, inv


def _ln_bias_f32(x_ref, w_ref, b_ref, o_ref):
    centered, inv = _stats_f32(x_ref)
    w = w_ref[...].astype(jnp.float32)
    b = b_ref[...].astype(jnp.float32)
    o_ref[...] = (centered * inv * w + b).astype(o_ref.dtype)


def _ln_nobias_f32(x_ref, w_ref, o_ref):
    centered, inv = _stats_f32(x_ref)
    w = w_ref[...].astype(jnp.float32)
    o_ref[...] = (centered * inv * w).astype(o_ref.dtype)


def _ln_bias_lp(x_ref, w_ref, b_ref, o_ref):
    # Low-precision affine tail (v6e/v7x, 16-bit float I/O): stats in f32,
    # xhat cast to the I/O dtype before * w + b (w/b pre-cast in the wrapper).
    centered, inv = _stats_f32(x_ref)
    xhat = (centered * inv).astype(o_ref.dtype)
    o_ref[...] = (xhat * w_ref[...] + b_ref[...]).astype(o_ref.dtype)


def _ln_nobias_lp(x_ref, w_ref, o_ref):
    centered, inv = _stats_f32(x_ref)
    xhat = (centered * inv).astype(o_ref.dtype)
    o_ref[...] = (xhat * w_ref[...]).astype(o_ref.dtype)


# ----------------------------------------------------------------------------
# Wrapper.
# ----------------------------------------------------------------------------
def layer_norm(x, weight, bias=None, *, row_tile=None):
    """LayerNorm over the last dim. x: (..., D), weight: (D,), bias: (D,)|None."""
    orig_shape = x.shape
    D = orig_shape[-1]
    rows = 1
    for s in orig_shape[:-1]:
        rows *= s
    x2 = x.reshape(rows, D)

    itemsize = jnp.dtype(x.dtype).itemsize
    gen_class, gen, vmem_limit, num_tc = _generation_params()
    # bf16/f16 affine tail only where the VALU runs 16-bit natively (v6e/v7x).
    lp_affine = (
        gen is not None
        and gen >= 6
        and itemsize == 2
        and jnp.issubdtype(x.dtype, jnp.floating)
    )

    if row_tile is None:
        budget = _tile_elems_budget(itemsize, gen_class)
        row_tile = _pick_row_tile(rows, D, itemsize, budget, 4 * num_tc)

    # No wrapper pad: trailing partial block is masked by Pallas (rows are
    # independent, garbage rows in the tail never contaminate valid rows and
    # their writes are discarded).
    grid = (pl.cdiv(rows, row_tile),)

    w2 = weight.reshape(1, D)
    if lp_affine:
        w2 = w2.astype(x.dtype)

    x_spec = pl.BlockSpec((row_tile, D), lambda i: (i, 0))
    p_spec = pl.BlockSpec((1, D), lambda i: (0, 0))
    o_spec = pl.BlockSpec((row_tile, D), lambda i: (i, 0))
    compiler_params = pltpu.CompilerParams(
        dimension_semantics=("parallel",),
        vmem_limit_bytes=int(vmem_limit),
    )
    out_shape = jax.ShapeDtypeStruct((rows, D), x.dtype)

    if bias is None:
        kernel = _ln_nobias_lp if lp_affine else _ln_nobias_f32
        in_specs = [x_spec, p_spec]
        args = (x2, w2)
    else:
        b2 = bias.reshape(1, D)
        if lp_affine:
            b2 = b2.astype(x.dtype)
        kernel = _ln_bias_lp if lp_affine else _ln_bias_f32
        in_specs = [x_spec, p_spec, p_spec]
        args = (x2, w2, b2)

    out = pl.pallas_call(
        kernel,
        out_shape=out_shape,
        grid_spec=pltpu.PrefetchScalarGridSpec(
            num_scalar_prefetch=0,
            grid=grid,
            in_specs=in_specs,
            out_specs=o_spec,
        ),
        compiler_params=compiler_params,
    )(*args)

    return out.reshape(orig_shape)


# ----------------------------------------------------------------------------
# Reference + tests.
# ----------------------------------------------------------------------------
def _ref_layer_norm(x, weight, bias):
    xf = x.astype(jnp.float32)
    mean = jnp.mean(xf, axis=-1, keepdims=True)
    var = jnp.mean((xf - mean) ** 2, axis=-1, keepdims=True)
    y = (xf - mean) / jnp.sqrt(var + EPS) * weight.astype(jnp.float32)
    if bias is not None:
        y = y + bias.astype(jnp.float32)
    return y


if __name__ == "__main__":
    key = jax.random.PRNGKey(0)
    k1, k2, k3 = jax.random.split(key, 3)

    # --- Test 1: module-implied demo shape (batch=2, seq=8, hidden=32), f32.
    B, T, D = 2, 8, 32
    x = jax.random.normal(k1, (B, T, D), dtype=jnp.float32)
    weight = jnp.ones((D,), dtype=jnp.float32)   # matches nn.Module init
    bias = jnp.zeros((D,), dtype=jnp.float32)

    y = layer_norm(x, weight, bias)
    y_nb = layer_norm(x, weight, None)
    jax.block_until_ready(y)
    jax.block_until_ready(y_nb)
    ref = _ref_layer_norm(x, weight, bias)
    ref_nb = _ref_layer_norm(x, weight, None)
    assert jnp.allclose(y, ref, atol=1e-5, rtol=1e-5)
    assert jnp.allclose(y_nb, ref_nb, atol=1e-5, rtol=1e-5)

    # --- Test 2: ragged rows (rows % row_tile != 0) exercises the masked
    #             trailing partial block for both kernels.  rows = 3*5 = 15.
    Dr = 128
    xr = jax.random.normal(k2, (3, 5, Dr), dtype=jnp.float32)
    wr = 0.5 + jax.random.uniform(k3, (Dr,), dtype=jnp.float32)
    br = jax.random.normal(k3, (Dr,), dtype=jnp.float32) * 0.1
    yr = layer_norm(xr, wr, br, row_tile=8)
    yr_nb = layer_norm(xr, wr, None, row_tile=8)
    jax.block_until_ready(yr)
    jax.block_until_ready(yr_nb)
    assert jnp.allclose(yr, _ref_layer_norm(xr, wr, br), atol=1e-5, rtol=1e-5)
    assert jnp.allclose(yr_nb, _ref_layer_norm(xr, wr, None), atol=1e-5, rtol=1e-5)

    # --- Test 3: bf16 I/O (low-precision affine tail on v6e/v7x, f32 on v5e).
    xb = jax.random.normal(k2, (2, 24, Dr), dtype=jnp.bfloat16)
    yb = layer_norm(xb, wr, br)
    jax.block_until_ready(yb)
    refb = _ref_layer_norm(xb, wr, br)
    assert jnp.allclose(yb.astype(jnp.float32), refb, atol=5e-2, rtol=2e-2)

    print("KERNEL_OK")
</pallas_src>

<mosaic_0001>
module attributes {stable_mosaic.version = 11 : i64} {
  func.func @_ln_bias_f32(%arg0: i32, %arg1: memref<16x32xf32, #tpu.memory_space<vmem>>, %arg2: memref<1x32xf32, #tpu.memory_space<vmem>>, %arg3: memref<1x32xf32, #tpu.memory_space<vmem>>, %arg4: memref<16x32xf32, #tpu.memory_space<vmem>>) attributes {dimension_semantics = [#tpu.dimension_semantics<parallel>], iteration_bounds = array<i64: 1>, scalar_prefetch = 0 : i64, scratch_operands = 0 : i64, tpu.core_type = #tpu.core_type<tc>, window_params = [{transform_indices = @transform_0, window_bounds = array<i64: 16, 32>}, {pipeline_mode = #tpu.pipeline_mode<synchronous>, transform_indices = @transform_1, window_bounds = array<i64: 1, 32>}, {pipeline_mode = #tpu.pipeline_mode<synchronous>, transform_indices = @transform_2, window_bounds = array<i64: 1, 32>}, {transform_indices = @transform_3, window_bounds = array<i64: 16, 32>}]} {
    %c0 = arith.constant 0 : index
    %c0_0 = arith.constant 0 : index
    %0 = vector.load %arg1[%c0, %c0_0] : memref<16x32xf32, #tpu.memory_space<vmem>>, vector<16x32xf32>
    %cst = arith.constant dense<0.000000e+00> : vector<16xf32>
    %1 = vector.multi_reduction <add>, %0, %cst [1] : vector<16x32xf32> to vector<16xf32>
    %2 = vector.shape_cast %1 : vector<16xf32> to vector<16x1xf32>
    %cst_1 = arith.constant 3.200000e+01 : f32
    %3 = vector.broadcast %cst_1 : f32 to vector<16x1xf32>
    %4 = arith.divf %2, %3 : vector<16x1xf32>
    %5 = vector.broadcast %4 : vector<16x1xf32> to vector<16x32xf32>
    %6 = arith.subf %0, %5 : vector<16x32xf32>
    %7 = arith.mulf %6, %6 : vector<16x32xf32>
    %cst_2 = arith.constant dense<0.000000e+00> : vector<16xf32>
    %8 = vector.multi_reduction <add>, %7, %cst_2 [1] : vector<16x32xf32> to vector<16xf32>
    %9 = vector.shape_cast %8 : vector<16xf32> to vector<16x1xf32>
    %cst_3 = arith.constant 3.200000e+01 : f32
    %10 = vector.broadcast %cst_3 : f32 to vector<16x1xf32>
    %11 = arith.divf %9, %10 : vector<16x1xf32>
    %cst_4 = arith.constant 9.99999974E-6 : f32
    %12 = vector.broadcast %cst_4 : f32 to vector<16x1xf32>
    %13 = arith.addf %11, %12 : vector<16x1xf32>
    %14 = math.rsqrt %13 : vector<16x1xf32>
    %c0_5 = arith.constant 0 : index
    %c0_6 = arith.constant 0 : index
    %15 = vector.load %arg2[%c0_5, %c0_6] : memref<1x32xf32, #tpu.memory_space<vmem>>, vector<1x32xf32>
    %c0_7 = arith.constant 0 : index
    %c0_8 = arith.constant 0 : index
    %16 = vector.load %arg3[%c0_7, %c0_8] : memref<1x32xf32, #tpu.memory_space<vmem>>, vector<1x32xf32>
    %17 = vector.broadcast %14 : vector<16x1xf32> to vector<16x32xf32>
    %18 = arith.mulf %6, %17 : vector<16x32xf32>
    %19 = vector.broadcast %15 : vector<1x32xf32> to vector<16x32xf32>
    %20 = arith.mulf %18, %19 : vector<16x32xf32>
    %21 = vector.broadcast %16 : vector<1x32xf32> to vector<16x32xf32>
    %22 = arith.addf %20, %21 : vector<16x32xf32>
    %c0_9 = arith.constant 0 : index
    %c0_10 = arith.constant 0 : index
    %23 = vector.load %arg4[%c0_9, %c0_10] : memref<16x32xf32, #tpu.memory_space<vmem>>, vector<16x32xf32>
    tpu.vector_store %arg4[%c0_9, %c0_10], %22 {strides = array<i32>} : memref<16x32xf32, #tpu.memory_space<vmem>>, vector<16x32xf32>,
    return
  }
  func.func @transform_0(%arg0: i32) -> (i32, i32) {
    %c0_i32 = arith.constant 0 : i32
    %c0_i32_0 = arith.constant 0 : i32
    return %arg0, %c0_i32 : i32, i32
  }
  func.func @transform_1(%arg0: i32) -> (i32, i32) {
    %c0_i32 = arith.constant 0 : i32
    %c0_i32_0 = arith.constant 0 : i32
    %c0_i32_1 = arith.constant 0 : i32
    return %c0_i32, %c0_i32_0 : i32, i32
  }
  func.func @transform_2(%arg0: i32) -> (i32, i32) {
    %c0_i32 = arith.constant 0 : i32
    %c0_i32_0 = arith.constant 0 : i32
    %c0_i32_1 = arith.constant 0 : i32
    return %c0_i32, %c0_i32_0 : i32, i32
  }
  func.func @transform_3(%arg0: i32) -> (i32, i32) {
    %c0_i32 = arith.constant 0 : i32
    %c0_i32_0 = arith.constant 0 : i32
    return %arg0, %c0_i32 : i32, i32
  }
}

</mosaic_0001>

<bundles_post_ra>
// kernel: tpu_custom_call.1
= control target key start
LH: loop header
LB: loop body
LE: loop exit
PB: predicated region body
PF: predicated region fallthrough
CT: control target
= control target key end

     0   :  { %8 = vsyncpa [#allocation3], 0  ;;  %s198_s0 = inlined_call_operand.hbm [shape: f32[16,32], index: 0, kind: input, shape index: {}]   ;;  %s199_s1 = inlined_call_operand.vmem [shape: f32[1,32], index: 1, kind: input, shape index: {}]   ;;  %s200_s2 = inlined_call_operand.vmem [shape: f32[1,32], index: 2, kind: input, shape index: {}]   ;;  %s201_s3 = inlined_call_operand.hbm [shape: f32[16,32], index: 3, kind: output, shape index: {}]  }
   0x1   :  { %9 = vsyncpa [#allocation4], 0  ;;  %s150_s12 = smov [#allocation2]  }
   0x2   :  { %s15_s13 = sshll.u32 %s150_s12, 4  ;;  %s16_s13 = int_to_ptr.vmem [resolvable:$true] %s15_s13 }
   0x3   :  { %s114_s14 = scalar_lea.vmem %s16_s13, 256  ;;  %p119_p1 = scmp.lt.s32.totalorder %s16_s13, %s16_s13 }
   0x4   :  { %p115_p0 = scmp.ne.s32.totalorder %s16_s13, %s114_s14  ;;  %p120_p2 = scmp.lt.s32.totalorder %s114_s14, %s114_s14 }
   0x6   :  { %p121_p3 = por %p120_p2, %p119_p1 }
   0x8   :  { %p122_p4 = pnand %p121_p3, %p115_p0 }
   0xa   :  { %125 = shalt.err (!%p122_p4)
}
   0xb   :  { %s151_s15 = smov 128   ;;  %s152_s16 = smov 8  }
   0xc   :  { %21 = dma.hbm_to_vmem [thread:$0]  %s198_s0, 256, %s16_s13, [#allocation3], %s151_s15, %s151_s15, %s152_s16  }
   0xd   :  { %146 = dma.done.wait [#allocation3], 256  }
   0xe   :  { %147 = vsyncadd [#allocation3], 4294967040  ;;  %vm31_vm0 = vcmask 261120   ;;  %v29_v0 = vld [vmem:[#allocation2] sm:$0xff]  ;;  %v30_v1 = vld [vmem:[#allocation2 + $0x8] sm:$0xff]  ;;  %s153_s22 = smov [#allocation5]  }
   0xf   :  { %v32_v2 = vsel %vm31_vm0, %v29_v0, 0.0  ;;  %v35_v3 = vsel %vm31_vm0, %v30_v1, 0.0  ;;  %v96_v21 = vld [vmem:[%s199_s1] ss:$0 sm:$0xff]  ;;  %s84_s23 = sshll.u32 %s153_s22, 4  ;;  %s85_s23 = int_to_ptr.vmem [resolvable:$true] %s84_s23 }
  0x10   :  { %33 = vadd.xlane.f32.xlu0 %v32_v2  ;;  %v97_v23 = vld [vmem:[%s200_s2] ss:$0 sm:$0xff]  ;;  %s126_s24 = scalar_lea.vmem %s85_s23, 256  ;;  %p131_p6 = scmp.lt.s32.totalorder %s85_s23, %s85_s23 }
  0x11   :  { %p127_p5 = scmp.ne.s32.totalorder %s85_s23, %s126_s24  ;;  %p132_p7 = scmp.lt.s32.totalorder %s126_s24, %s126_s24 }
  0x13   :  { %p133_p8 = por %p132_p7, %p131_p6 }
  0x14   :  { %36 = vadd.xlane.f32.xlu0 %v35_v3 }
  0x15   :  { %p134_p9 = pnand %p133_p8, %p127_p5 }
  0x99   :  { %v34_v4 = vpop.xlane.xlu0 %33 }
  0x9a   :  { %v39_v5 = vmul.f32 0.03125, %v34_v4 }
  0x9c   :  { %v41_v6 = vsub.f32 %v29_v0, %v39_v5 }
  0x9d   :  { %v37_v7 = vpop.xlane.xlu0 %36 }
  0x9e   :  { %v40_v8 = vmul.f32 0.03125, %v37_v7  ;;  %v43_v9 = vmul.f32 %v41_v6, %v41_v6 }
  0xa0   :  { %v42_v10 = vsub.f32 %v30_v1, %v40_v8  ;;  %v45_v11 = vsel %vm31_vm0, %v43_v9, 0.0 }
  0xa1   :  { %46 = vadd.xlane.f32.xlu1 %v45_v11 }
  0xa2   :  { %v44_v12 = vmul.f32 %v42_v10, %v42_v10 }
  0xa4   :  { %v48_v13 = vsel %vm31_vm0, %v44_v12, 0.0 }
  0xa5   :  { %49 = vadd.xlane.f32.xlu1 %v48_v13 }
 0x12a   :  { %v47_v14 = vpop.xlane.xlu1 %46 }
 0x12b   :  { %v51_v15 = vmul.f32 0.03125, %v47_v14 }
 0x12d   :  { %v53_v16 = vadd.f32 1e-05, %v51_v15 }
 0x12e   :  { %v50_v17 = vpop.xlane.xlu1 %49 }
 0x12f   :  { %102 = vrsqrt.f32 %v53_v16  ;;  %v52_v18 = vmul.f32 0.03125, %v50_v17 }
 0x131   :  { %v54_v19 = vadd.f32 1e-05, %v52_v18 }
 0x133   :  { %104 = vrsqrt.f32 %v54_v19 }
 0x13c   :  { %v103_v20 = vpop.eup %102 }
 0x13d   :  { %v59_v22 = vmul.f32 %v103_v20, %v41_v6 }
 0x13f   :  { %v67_v24 = vmul.f32 %v96_v21, %v59_v22 }
 0x140   :  { %v105_v25 = vpop.eup %104 }
 0x141   :  { %v60_v26 = vmul.f32 %v105_v25, %v42_v10  ;;  %v75_v27 = vadd.f32 %v97_v23, %v67_v24 }
 0x143   :  { %v68_v28 = vmul.f32 %v96_v21, %v60_v26  ;;  %77 = vst.msk [vmem:[#allocation5] sm:$0xff] %vm31_vm0, %v75_v27 }
 0x145   :  { %v76_v29 = vadd.f32 %v97_v23, %v68_v28 }
 0x147   :  { %78 = vst.msk [vmem:[#allocation5 + $0x8] sm:$0xff] %vm31_vm0, %v76_v29 }
 0x148   :  { %137 = shalt.err (!%p134_p9)
}
 0x149   :  { %90 = dma.vmem_to_hbm [thread:$0]  %s85_s23, 256, %s201_s3, [#allocation4], %s151_s15, %s151_s15, %s152_s16  }
 0x14a   :  { %148 = dma.done.wait [#allocation4], 256  }
 0x14b   :  { %149 = vsyncadd [#allocation4], 4294967040 }
 0x14c   :  { %94 = vsyncpa [#allocation3], 1 }
 0x14d   :  { %95 = vsyncpa [#allocation4], 1 }

</bundles_post_ra>
